<compile_context>
chip_gen: v7x
topology: tpu7x:2x2x1
jax: 0.10.0
libtpu: 0.0.40
codegen_flags: <defaults>
</compile_context>

<pallas_src>
import jax
import jax.numpy as jnp
from jax.experimental import pallas as pl
from jax.experimental.pallas import tpu as pltpu

# ---------------- hyper-params (conv_layer_num=2, hidden_layer_num=1) -------
B = 2
L = 24                 # input sequence length (24 -> pool -> 12 -> pool -> 6)
CIN = 4                # input_size
KNUM = 64              # kernel_num
KSIZE = 3              # kernel_size (odd -> 'same' convolution)
PAD = KSIZE // 2
POOL = 2               # pooling_size
HIDDEN = 32            # hidden_layer_size
L1 = L // POOL         # 12 (after pool1)
L2 = L1 // POOL        # 6  (after pool2)
MLP_FIRST = KNUM * L2  # 384 == 64 * 6
NCLASS = 26
EPS = 1e-5             # BatchNorm1d default eps

LP = L + 2 * PAD       # 26  padded conv1 input length
L1P = L1 + 2 * PAD     # 14  padded conv2 input length

# ------- packed parameter buffer layout (rows x 64 lanes, f32) ---------------
ROW_B1 = 0                            # conv1 bias            (1, 64)
ROW_B2 = 1                            # conv2 bias            (1, 64)
ROW_BF1 = 2                           # fc1 bias (BN folded)  (1, 64) cols>=32 zero
ROW_BF2 = 3                           # fc2 bias              (1, 64) cols>=26 zero
ROW_W1 = 8                            # conv1 taps, tap k at +k*8, (CIN, 64) each
W1_STRIDE = 8                         #   (8-row aligned tap stride)
ROW_W2 = ROW_W1 + KSIZE * W1_STRIDE   # 32: conv2 taps, tap k at +k*64, (64, 64)
ROW_WF1 = ROW_W2 + KSIZE * KNUM       # 224: fc1 blocks, block l at +l*64, (64, 64)
ROW_WF2 = ROW_WF1 + L2 * KNUM         # 608: fc2, (64, 64) zero-padded
NROWS = ROW_WF2 + KNUM                # 672


def _net_fused_kernel(x_ref, p_ref, out_ref, a1_ref, pp_ref, a2_ref):
    """Entire forward pass; everything resident in VMEM.

    x:  (B*(L+2P), CIN)   pre-padded channels-last input, batch b at rows b*LP
    p:  (NROWS, KNUM)     packed parameters (see ROW_* layout above)
    a1: (B*L,  KNUM)      conv1+ReLU output
    pp: (B*L1P, KNUM)     zero-padded conv2 input (pool1 output in interior rows)
    a2: (B*L1, KNUM)      conv2+ReLU output
    """
    f32 = jnp.float32

    b1 = p_ref[ROW_B1:ROW_B1 + 1, :]
    b2 = p_ref[ROW_B2:ROW_B2 + 1, :]
    bf1 = p_ref[ROW_BF1:ROW_BF1 + 1, :]
    bf2 = p_ref[ROW_BF2:ROW_BF2 + 1, :]
    w1 = [p_ref[ROW_W1 + k * W1_STRIDE: ROW_W1 + k * W1_STRIDE + CIN, :]
          for k in range(KSIZE)]
    w2 = [p_ref[ROW_W2 + k * KNUM: ROW_W2 + (k + 1) * KNUM, :]
          for k in range(KSIZE)]

    # 'same' zero padding for conv2 lives in this scratch; zero it once.
    pp_ref[...] = jnp.zeros_like(pp_ref)

    # ---- conv1 (tap-sum, no im2col concats) + ReLU --------------------------
    for b in range(B):
        xb = b * LP
        acc = jnp.dot(x_ref[pl.ds(xb, L), :], w1[0], preferred_element_type=f32)
        for k in range(1, KSIZE):
            acc = acc + jnp.dot(x_ref[pl.ds(xb + k, L), :], w1[k],
                                preferred_element_type=f32)
        a1_ref[pl.ds(b * L, L), :] = jnp.maximum(acc + b1, 0.0)       # (L, 64)

    # ---- pool1: MaxPool1d(2,2) -> interior rows of padded conv2 input -------
    for b in range(B):
        ev = a1_ref[pl.ds(b * L, L1, stride=POOL), :]                 # (L1, 64)
        od = a1_ref[pl.ds(b * L + 1, L1, stride=POOL), :]
        pp_ref[pl.ds(b * L1P + PAD, L1), :] = jnp.maximum(ev, od)

    # ---- conv2 (tap-sum) + ReLU ---------------------------------------------
    for b in range(B):
        pb = b * L1P
        acc = jnp.dot(pp_ref[pl.ds(pb, L1), :], w2[0], preferred_element_type=f32)
        for k in range(1, KSIZE):
            acc = acc + jnp.dot(pp_ref[pl.ds(pb + k, L1), :], w2[k],
                                preferred_element_type=f32)
        a2_ref[pl.ds(b * L1, L1), :] = jnp.maximum(acc + b2, 0.0)     # (L1, 64)

    # ---- pool2 + fc1 fused (no flatten): sum over spatial positions l -------
    # BatchNorm eval affine and PyTorch's NCL flatten order are folded into the
    # per-position fc1 weight blocks (and bf1) at parameter-prep time.
    acc = None
    for l in range(L2):
        h2l = jnp.maximum(a2_ref[pl.ds(2 * l, B, stride=L1), :],
                          a2_ref[pl.ds(2 * l + 1, B, stride=L1), :])  # (B, 64)
        wl = p_ref[ROW_WF1 + l * KNUM: ROW_WF1 + (l + 1) * KNUM, :]   # (64, 64)
        t = jnp.dot(h2l, wl, preferred_element_type=f32)
        acc = t if acc is None else acc + t

    # TODO(synk): Dropout(p=0.1) training-mode masking not implemented
    # (identity at inference).
    h = jnp.maximum(acc + bf1, 0.0)                  # (B, 64); cols >= HIDDEN are 0
    out = jnp.dot(h, p_ref[ROW_WF2:ROW_WF2 + KNUM, :],
                  preferred_element_type=f32) + bf2  # (B, 64); cols >= 26 are 0
    out_ref[...] = out[:, :NCLASS]


@jax.jit
def net_forward(x, pbuf):
    """x: (B, L, CIN) — the same tensor the PyTorch forward receives (it
    transposes to NCL internally; this channels-last kernel consumes (B, L, C)
    directly). pbuf: packed (NROWS, KNUM) parameter buffer."""
    xp = jnp.pad(x.astype(jnp.float32), ((0, 0), (PAD, PAD), (0, 0)))
    xflat = xp.reshape(B * LP, CIN)
    return pl.pallas_call(
        _net_fused_kernel,
        out_shape=jax.ShapeDtypeStruct((B, NCLASS), jnp.float32),
        in_specs=[pl.BlockSpec(memory_space=pltpu.MemorySpace.VMEM),
                  pl.BlockSpec(memory_space=pltpu.MemorySpace.VMEM)],
        out_specs=pl.BlockSpec(memory_space=pltpu.MemorySpace.VMEM),
        scratch_shapes=[
            pltpu.VMEM((B * L, KNUM), jnp.float32),    # conv1+ReLU
            pltpu.VMEM((B * L1P, KNUM), jnp.float32),  # padded pool1 / conv2 input
            pltpu.VMEM((B * L1, KNUM), jnp.float32),   # conv2+ReLU
        ],
    )(xflat, pbuf)


# --------------------------- parameter handling ------------------------------
def init_params(key):
    """Raw parameters in PyTorch-equivalent layouts (deterministic)."""
    ks = jax.random.split(key, 8)

    def u(k, shape, fan_in):
        lim = 1.0 / jnp.sqrt(float(fan_in))
        return jax.random.uniform(k, shape, jnp.float32, -lim, lim)

    p = {}
    # Conv1d weights stored as (K, Cin, Cout)  (PyTorch is (Cout, Cin, K)).
    p["w_c1"] = u(ks[0], (KSIZE, CIN, KNUM), CIN * KSIZE)
    p["b_c1"] = u(ks[1], (1, KNUM), CIN * KSIZE)
    p["w_c2"] = u(ks[2], (KSIZE, KNUM, KNUM), KNUM * KSIZE)
    p["b_c2"] = u(ks[3], (1, KNUM), KNUM * KSIZE)
    # BatchNorm1d affine + running stats over PyTorch flatten index p = c*L2 + l.
    p["gamma"] = jnp.full((MLP_FIRST,), 1.1, jnp.float32)
    p["beta"] = jnp.full((MLP_FIRST,), 0.05, jnp.float32)
    p["mean"] = jnp.zeros((MLP_FIRST,), jnp.float32)
    p["var"] = jnp.ones((MLP_FIRST,), jnp.float32)
    # Linear weights stored as (in, out); fc1 rows indexed by p = c*L2 + l.
    p["w_f1"] = u(ks[4], (MLP_FIRST, HIDDEN), MLP_FIRST)
    p["b_f1"] = u(ks[5], (1, HIDDEN), MLP_FIRST)
    p["w_f2"] = u(ks[6], (HIDDEN, NCLASS), HIDDEN)
    p["b_f2"] = u(ks[7], (1, NCLASS), HIDDEN)
    return p


def prepare_params(raw):
    """One-time constant folding + packing into a single (NROWS, KNUM) buffer:
      * conv weights split per tap at 8-aligned row offsets,
      * eval-mode BatchNorm folded into fc1 (w' = diag(s) @ w, b' = b + t @ w),
      * PyTorch's NCL channel-major flatten permutation folded into fc1 by
        reshaping it into L2 per-position (KNUM, HIDDEN) blocks,
      * fc1/fc2 zero-padded to 64 lanes so every kernel matmul is 64-wide."""
    # BatchNorm (eval): y = x*s + t,  s = gamma*rsqrt(var+eps),  t = beta - mean*s
    s = raw["gamma"] * jax.lax.rsqrt(raw["var"] + EPS)
    t = raw["beta"] - raw["mean"] * s
    w1f = raw["w_f1"] * s[:, None]               # (MLP_FIRST, HIDDEN), row p=c*L2+l
    b1f = raw["b_f1"][0] + t @ raw["w_f1"]       # (HIDDEN,)
    # Kernel consumes fc1 as L2 blocks W[l] with W[l][c, h] = w1f[c*L2 + l, h].
    wf1_blocks = w1f.reshape(KNUM, L2, HIDDEN).transpose(1, 0, 2)   # (L2, KNUM, HIDDEN)

    buf = jnp.zeros((NROWS, KNUM), jnp.float32)
    buf = buf.at[ROW_B1].set(raw["b_c1"][0])
    buf = buf.at[ROW_B2].set(raw["b_c2"][0])
    buf = buf.at[ROW_BF1, :HIDDEN].set(b1f)
    buf = buf.at[ROW_BF2, :NCLASS].set(raw["b_f2"][0])
    for k in range(KSIZE):
        r1 = ROW_W1 + k * W1_STRIDE
        buf = buf.at[r1:r1 + CIN, :].set(raw["w_c1"][k])
        r2 = ROW_W2 + k * KNUM
        buf = buf.at[r2:r2 + KNUM, :].set(raw["w_c2"][k])
    for l in range(L2):
        r = ROW_WF1 + l * KNUM
        buf = buf.at[r:r + KNUM, :HIDDEN].set(wf1_blocks[l])
    buf = buf.at[ROW_WF2:ROW_WF2 + HIDDEN, :NCLASS].set(raw["w_f2"])
    return buf


if __name__ == "__main__":
    key = jax.random.PRNGKey(0)
    kx, kp = jax.random.split(key)
    x = jax.random.normal(kx, (B, L, CIN), jnp.float32)      # (2, 24, 4)
    pbuf = prepare_params(init_params(kp))
    out = net_forward(x, pbuf)
    jax.block_until_ready(out)
    assert out.shape == (B, NCLASS) and out.dtype == jnp.float32
    print("KERNEL_OK")
</pallas_src>

<mosaic_0001>
module attributes {stable_mosaic.version = 11 : i64} {
  func.func @_net_fused_kernel(%arg0: memref<52x4xf32, #tpu.memory_space<vmem>>, %arg1: memref<672x64xf32, #tpu.memory_space<vmem>>, %arg2: memref<2x26xf32, #tpu.memory_space<vmem>>, %arg3: memref<48x64xf32, #tpu.memory_space<vmem>>, %arg4: memref<28x64xf32, #tpu.memory_space<vmem>>, %arg5: memref<24x64xf32, #tpu.memory_space<vmem>>) attributes {dimension_semantics = [], scalar_prefetch = 0 : i64, scratch_operands = 3 : i64, tpu.core_type = #tpu.core_type<tc>} {
    %c0 = arith.constant 0 : index
    %c0_0 = arith.constant 0 : index
    %0 = vector.load %arg1[%c0, %c0_0] : memref<672x64xf32, #tpu.memory_space<vmem>>, vector<1x64xf32>
    %c1 = arith.constant 1 : index
    %c0_1 = arith.constant 0 : index
    %1 = vector.load %arg1[%c1, %c0_1] : memref<672x64xf32, #tpu.memory_space<vmem>>, vector<1x64xf32>
    %c2 = arith.constant 2 : index
    %c0_2 = arith.constant 0 : index
    %2 = vector.load %arg1[%c2, %c0_2] : memref<672x64xf32, #tpu.memory_space<vmem>>, vector<1x64xf32>
    %c3 = arith.constant 3 : index
    %c0_3 = arith.constant 0 : index
    %3 = vector.load %arg1[%c3, %c0_3] : memref<672x64xf32, #tpu.memory_space<vmem>>, vector<1x64xf32>
    %c8 = arith.constant 8 : index
    %c0_4 = arith.constant 0 : index
    %4 = vector.load %arg1[%c8, %c0_4] : memref<672x64xf32, #tpu.memory_space<vmem>>, vector<4x64xf32>
    %c16 = arith.constant 16 : index
    %c0_5 = arith.constant 0 : index
    %5 = vector.load %arg1[%c16, %c0_5] : memref<672x64xf32, #tpu.memory_space<vmem>>, vector<4x64xf32>
    %c24 = arith.constant 24 : index
    %c0_6 = arith.constant 0 : index
    %6 = vector.load %arg1[%c24, %c0_6] : memref<672x64xf32, #tpu.memory_space<vmem>>, vector<4x64xf32>
    %c32 = arith.constant 32 : index
    %c0_7 = arith.constant 0 : index
    %7 = vector.load %arg1[%c32, %c0_7] : memref<672x64xf32, #tpu.memory_space<vmem>>, vector<64x64xf32>
    %c96 = arith.constant 96 : index
    %c0_8 = arith.constant 0 : index
    %8 = vector.load %arg1[%c96, %c0_8] : memref<672x64xf32, #tpu.memory_space<vmem>>, vector<64x64xf32>
    %c160 = arith.constant 160 : index
    %c0_9 = arith.constant 0 : index
    %9 = vector.load %arg1[%c160, %c0_9] : memref<672x64xf32, #tpu.memory_space<vmem>>, vector<64x64xf32>
    %cst = arith.constant 0.000000e+00 : f32
    %10 = vector.broadcast %cst : f32 to vector<28x64xf32>
    %c0_10 = arith.constant 0 : index
    %c0_11 = arith.constant 0 : index
    %11 = vector.load %arg4[%c0_10, %c0_11] : memref<28x64xf32, #tpu.memory_space<vmem>>, vector<28x64xf32>
    tpu.vector_store %arg4[%c0_10, %c0_11], %10 {strides = array<i32>} : memref<28x64xf32, #tpu.memory_space<vmem>>, vector<28x64xf32>,
    %c0_12 = arith.constant 0 : index
    %c0_13 = arith.constant 0 : index
    %12 = vector.load %arg0[%c0_12, %c0_13] : memref<52x4xf32, #tpu.memory_space<vmem>>, vector<24x4xf32>
    %cst_14 = arith.constant dense<0.000000e+00> : vector<24x64xf32>
    %13 = tpu.matmul %12, %4, %cst_14 {dimension_numbers = #tpu.dot_dimension_numbers<[1], [0], [0], [1], [0, 0, 1, 1], [], []>} : vector<24x4xf32>, vector<4x64xf32>, vector<24x64xf32> -> vector<24x64xf32>
    %c1_15 = arith.constant 1 : index
    %c0_16 = arith.constant 0 : index
    %14 = vector.load %arg0[%c1_15, %c0_16] : memref<52x4xf32, #tpu.memory_space<vmem>>, vector<24x4xf32>
    %cst_17 = arith.constant dense<0.000000e+00> : vector<24x64xf32>
    %15 = tpu.matmul %14, %5, %cst_17 {dimension_numbers = #tpu.dot_dimension_numbers<[1], [0], [0], [1], [0, 0, 1, 1], [], []>} : vector<24x4xf32>, vector<4x64xf32>, vector<24x64xf32> -> vector<24x64xf32>
    %16 = arith.addf %13, %15 : vector<24x64xf32>
    %c2_18 = arith.constant 2 : index
    %c0_19 = arith.constant 0 : index
    %17 = vector.load %arg0[%c2_18, %c0_19] : memref<52x4xf32, #tpu.memory_space<vmem>>, vector<24x4xf32>
    %cst_20 = arith.constant dense<0.000000e+00> : vector<24x64xf32>
    %18 = tpu.matmul %17, %6, %cst_20 {dimension_numbers = #tpu.dot_dimension_numbers<[1], [0], [0], [1], [0, 0, 1, 1], [], []>} : vector<24x4xf32>, vector<4x64xf32>, vector<24x64xf32> -> vector<24x64xf32>
    %19 = arith.addf %16, %18 : vector<24x64xf32>
    %20 = vector.broadcast %0 : vector<1x64xf32> to vector<24x64xf32>
    %21 = arith.addf %19, %20 : vector<24x64xf32>
    %cst_21 = arith.constant 0.000000e+00 : f32
    %22 = vector.broadcast %cst_21 : f32 to vector<24x64xf32>
    %23 = arith.maximumf %21, %22 : vector<24x64xf32>
    %c0_22 = arith.constant 0 : index
    %c0_23 = arith.constant 0 : index
    %24 = vector.load %arg3[%c0_22, %c0_23] : memref<48x64xf32, #tpu.memory_space<vmem>>, vector<24x64xf32>
    tpu.vector_store %arg3[%c0_22, %c0_23], %23 {strides = array<i32>} : memref<48x64xf32, #tpu.memory_space<vmem>>, vector<24x64xf32>,
    %c26 = arith.constant 26 : index
    %c0_24 = arith.constant 0 : index
    %25 = vector.load %arg0[%c26, %c0_24] : memref<52x4xf32, #tpu.memory_space<vmem>>, vector<24x4xf32>
    %cst_25 = arith.constant dense<0.000000e+00> : vector<24x64xf32>
    %26 = tpu.matmul %25, %4, %cst_25 {dimension_numbers = #tpu.dot_dimension_numbers<[1], [0], [0], [1], [0, 0, 1, 1], [], []>} : vector<24x4xf32>, vector<4x64xf32>, vector<24x64xf32> -> vector<24x64xf32>
    %c27 = arith.constant 27 : index
    %c0_26 = arith.constant 0 : index
    %27 = vector.load %arg0[%c27, %c0_26] : memref<52x4xf32, #tpu.memory_space<vmem>>, vector<24x4xf32>
    %cst_27 = arith.constant dense<0.000000e+00> : vector<24x64xf32>
    %28 = tpu.matmul %27, %5, %cst_27 {dimension_numbers = #tpu.dot_dimension_numbers<[1], [0], [0], [1], [0, 0, 1, 1], [], []>} : vector<24x4xf32>, vector<4x64xf32>, vector<24x64xf32> -> vector<24x64xf32>
    %29 = arith.addf %26, %28 : vector<24x64xf32>
    %c28 = arith.constant 28 : index
    %c0_28 = arith.constant 0 : index
    %30 = vector.load %arg0[%c28, %c0_28] : memref<52x4xf32, #tpu.memory_space<vmem>>, vector<24x4xf32>
    %cst_29 = arith.constant dense<0.000000e+00> : vector<24x64xf32>
    %31 = tpu.matmul %30, %6, %cst_29 {dimension_numbers = #tpu.dot_dimension_numbers<[1], [0], [0], [1], [0, 0, 1, 1], [], []>} : vector<24x4xf32>, vector<4x64xf32>, vector<24x64xf32> -> vector<24x64xf32>
    %32 = arith.addf %29, %31 : vector<24x64xf32>
    %33 = vector.broadcast %0 : vector<1x64xf32> to vector<24x64xf32>
    %34 = arith.addf %32, %33 : vector<24x64xf32>
    %cst_30 = arith.constant 0.000000e+00 : f32
    %35 = vector.broadcast %cst_30 : f32 to vector<24x64xf32>
    %36 = arith.maximumf %34, %35 : vector<24x64xf32>
    %c24_31 = arith.constant 24 : index
    %c0_32 = arith.constant 0 : index
    %37 = vector.load %arg3[%c24_31, %c0_32] : memref<48x64xf32, #tpu.memory_space<vmem>>, vector<24x64xf32>
    tpu.vector_store %arg3[%c24_31, %c0_32], %36 {strides = array<i32>} : memref<48x64xf32, #tpu.memory_space<vmem>>, vector<24x64xf32>,
    %c0_33 = arith.constant 0 : index
    %c0_34 = arith.constant 0 : index
    %38 = tpu.strided_load %arg3[%c0_33, %c0_34] {strides = array<i32: 2, 1>} : memref<48x64xf32, #tpu.memory_space<vmem>>, vector<12x64xf32>
    %c1_35 = arith.constant 1 : index
    %c0_36 = arith.constant 0 : index
    %39 = tpu.strided_load %arg3[%c1_35, %c0_36] {strides = array<i32: 2, 1>} : memref<48x64xf32, #tpu.memory_space<vmem>>, vector<12x64xf32>
    %40 = arith.maximumf %38, %39 : vector<12x64xf32>
    %c1_37 = arith.constant 1 : index
    %c0_38 = arith.constant 0 : index
    %41 = vector.load %arg4[%c1_37, %c0_38] : memref<28x64xf32, #tpu.memory_space<vmem>>, vector<12x64xf32>
    tpu.vector_store %arg4[%c1_37, %c0_38], %40 {strides = array<i32>} : memref<28x64xf32, #tpu.memory_space<vmem>>, vector<12x64xf32>,
    %c24_39 = arith.constant 24 : index
    %c0_40 = arith.constant 0 : index
    %42 = tpu.strided_load %arg3[%c24_39, %c0_40] {strides = array<i32: 2, 1>} : memref<48x64xf32, #tpu.memory_space<vmem>>, vector<12x64xf32>
    %c25 = arith.constant 25 : index
    %c0_41 = arith.constant 0 : index
    %43 = tpu.strided_load %arg3[%c25, %c0_41] {strides = array<i32: 2, 1>} : memref<48x64xf32, #tpu.memory_space<vmem>>, vector<12x64xf32>
    %44 = arith.maximumf %42, %43 : vector<12x64xf32>
    %c15 = arith.constant 15 : index
    %c0_42 = arith.constant 0 : index
    %45 = vector.load %arg4[%c15, %c0_42] : memref<28x64xf32, #tpu.memory_space<vmem>>, vector<12x64xf32>
    tpu.vector_store %arg4[%c15, %c0_42], %44 {strides = array<i32>} : memref<28x64xf32, #tpu.memory_space<vmem>>, vector<12x64xf32>,
    %c0_43 = arith.constant 0 : index
    %c0_44 = arith.constant 0 : index
    %46 = vector.load %arg4[%c0_43, %c0_44] : memref<28x64xf32, #tpu.memory_space<vmem>>, vector<12x64xf32>
    %cst_45 = arith.constant dense<0.000000e+00> : vector<12x64xf32>
    %47 = tpu.matmul %46, %7, %cst_45 {dimension_numbers = #tpu.dot_dimension_numbers<[1], [0], [0], [1], [0, 0, 1, 1], [], []>} : vector<12x64xf32>, vector<64x64xf32>, vector<12x64xf32> -> vector<12x64xf32>
    %c1_46 = arith.constant 1 : index
    %c0_47 = arith.constant 0 : index
    %48 = vector.load %arg4[%c1_46, %c0_47] : memref<28x64xf32, #tpu.memory_space<vmem>>, vector<12x64xf32>
    %cst_48 = arith.constant dense<0.000000e+00> : vector<12x64xf32>
    %49 = tpu.matmul %48, %8, %cst_48 {dimension_numbers = #tpu.dot_dimension_numbers<[1], [0], [0], [1], [0, 0, 1, 1], [], []>} : vector<12x64xf32>, vector<64x64xf32>, vector<12x64xf32> -> vector<12x64xf32>
    %50 = arith.addf %47, %49 : vector<12x64xf32>
    %c2_49 = arith.constant 2 : index
    %c0_50 = arith.constant 0 : index
    %51 = vector.load %arg4[%c2_49, %c0_50] : memref<28x64xf32, #tpu.memory_space<vmem>>, vector<12x64xf32>
    %cst_51 = arith.constant dense<0.000000e+00> : vector<12x64xf32>
    %52 = tpu.matmul %51, %9, %cst_51 {dimension_numbers = #tpu.dot_dimension_numbers<[1], [0], [0], [1], [0, 0, 1, 1], [], []>} : vector<12x64xf32>, vector<64x64xf32>, vector<12x64xf32> -> vector<12x64xf32>
    %53 = arith.addf %50, %52 : vector<12x64xf32>
    %54 = vector.broadcast %1 : vector<1x64xf32> to vector<12x64xf32>
    %55 = arith.addf %53, %54 : vector<12x64xf32>
    %cst_52 = arith.constant 0.000000e+00 : f32
    %56 = vector.broadcast %cst_52 : f32 to vector<12x64xf32>
    %57 = arith.maximumf %55, %56 : vector<12x64xf32>
    %c0_53 = arith.constant 0 : index
    %c0_54 = arith.constant 0 : index
    %58 = vector.load %arg5[%c0_53, %c0_54] : memref<24x64xf32, #tpu.memory_space<vmem>>, vector<12x64xf32>
    tpu.vector_store %arg5[%c0_53, %c0_54], %57 {strides = array<i32>} : memref<24x64xf32, #tpu.memory_space<vmem>>, vector<12x64xf32>,
    %c14 = arith.constant 14 : index
    %c0_55 = arith.constant 0 : index
    %59 = vector.load %arg4[%c14, %c0_55] : memref<28x64xf32, #tpu.memory_space<vmem>>, vector<12x64xf32>
    %cst_56 = arith.constant dense<0.000000e+00> : vector<12x64xf32>
    %60 = tpu.matmul %59, %7, %cst_56 {dimension_numbers = #tpu.dot_dimension_numbers<[1], [0], [0], [1], [0, 0, 1, 1], [], []>} : vector<12x64xf32>, vector<64x64xf32>, vector<12x64xf32> -> vector<12x64xf32>
    %c15_57 = arith.constant 15 : index
    %c0_58 = arith.constant 0 : index
    %61 = vector.load %arg4[%c15_57, %c0_58] : memref<28x64xf32, #tpu.memory_space<vmem>>, vector<12x64xf32>
    %cst_59 = arith.constant dense<0.000000e+00> : vector<12x64xf32>
    %62 = tpu.matmul %61, %8, %cst_59 {dimension_numbers = #tpu.dot_dimension_numbers<[1], [0], [0], [1], [0, 0, 1, 1], [], []>} : vector<12x64xf32>, vector<64x64xf32>, vector<12x64xf32> -> vector<12x64xf32>
    %63 = arith.addf %60, %62 : vector<12x64xf32>
    %c16_60 = arith.constant 16 : index
    %c0_61 = arith.constant 0 : index
    %64 = vector.load %arg4[%c16_60, %c0_61] : memref<28x64xf32, #tpu.memory_space<vmem>>, vector<12x64xf32>
    %cst_62 = arith.constant dense<0.000000e+00> : vector<12x64xf32>
    %65 = tpu.matmul %64, %9, %cst_62 {dimension_numbers = #tpu.dot_dimension_numbers<[1], [0], [0], [1], [0, 0, 1, 1], [], []>} : vector<12x64xf32>, vector<64x64xf32>, vector<12x64xf32> -> vector<12x64xf32>
    %66 = arith.addf %63, %65 : vector<12x64xf32>
    %67 = vector.broadcast %1 : vector<1x64xf32> to vector<12x64xf32>
    %68 = arith.addf %66, %67 : vector<12x64xf32>
    %cst_63 = arith.constant 0.000000e+00 : f32
    %69 = vector.broadcast %cst_63 : f32 to vector<12x64xf32>
    %70 = arith.maximumf %68, %69 : vector<12x64xf32>
    %c12 = arith.constant 12 : index
    %c0_64 = arith.constant 0 : index
    %71 = vector.load %arg5[%c12, %c0_64] : memref<24x64xf32, #tpu.memory_space<vmem>>, vector<12x64xf32>
    tpu.vector_store %arg5[%c12, %c0_64], %70 {strides = array<i32>} : memref<24x64xf32, #tpu.memory_space<vmem>>, vector<12x64xf32>,
    %c0_65 = arith.constant 0 : index
    %c0_66 = arith.constant 0 : index
    %72 = tpu.strided_load %arg5[%c0_65, %c0_66] {strides = array<i32: 12, 1>} : memref<24x64xf32, #tpu.memory_space<vmem>>, vector<2x64xf32>
    %c1_67 = arith.constant 1 : index
    %c0_68 = arith.constant 0 : index
    %73 = tpu.strided_load %arg5[%c1_67, %c0_68] {strides = array<i32: 12, 1>} : memref<24x64xf32, #tpu.memory_space<vmem>>, vector<2x64xf32>
    %74 = arith.maximumf %72, %73 : vector<2x64xf32>
    %c224 = arith.constant 224 : index
    %c0_69 = arith.constant 0 : index
    %75 = vector.load %arg1[%c224, %c0_69] : memref<672x64xf32, #tpu.memory_space<vmem>>, vector<64x64xf32>
    %cst_70 = arith.constant dense<0.000000e+00> : vector<2x64xf32>
    %76 = tpu.matmul %74, %75, %cst_70 {dimension_numbers = #tpu.dot_dimension_numbers<[1], [0], [0], [1], [0, 0, 1, 1], [], []>} : vector<2x64xf32>, vector<64x64xf32>, vector<2x64xf32> -> vector<2x64xf32>
    %c2_71 = arith.constant 2 : index
    %c0_72 = arith.constant 0 : index
    %77 = tpu.strided_load %arg5[%c2_71, %c0_72] {strides = array<i32: 12, 1>} : memref<24x64xf32, #tpu.memory_space<vmem>>, vector<2x64xf32>
    %c3_73 = arith.constant 3 : index
    %c0_74 = arith.constant 0 : index
    %78 = tpu.strided_load %arg5[%c3_73, %c0_74] {strides = array<i32: 12, 1>} : memref<24x64xf32, #tpu.memory_space<vmem>>, vector<2x64xf32>
    %79 = arith.maximumf %77, %78 : vector<2x64xf32>
    %c288 = arith.constant 288 : index
    %c0_75 = arith.constant 0 : index
    %80 = vector.load %arg1[%c288, %c0_75] : memref<672x64xf32, #tpu.memory_space<vmem>>, vector<64x64xf32>
    %cst_76 = arith.constant dense<0.000000e+00> : vector<2x64xf32>
    %81 = tpu.matmul %79, %80, %cst_76 {dimension_numbers = #tpu.dot_dimension_numbers<[1], [0], [0], [1], [0, 0, 1, 1], [], []>} : vector<2x64xf32>, vector<64x64xf32>, vector<2x64xf32> -> vector<2x64xf32>
    %82 = arith.addf %76, %81 : vector<2x64xf32>
    %c4 = arith.constant 4 : index
    %c0_77 = arith.constant 0 : index
    %83 = tpu.strided_load %arg5[%c4, %c0_77] {strides = array<i32: 12, 1>} : memref<24x64xf32, #tpu.memory_space<vmem>>, vector<2x64xf32>
    %c5 = arith.constant 5 : index
    %c0_78 = arith.constant 0 : index
    %84 = tpu.strided_load %arg5[%c5, %c0_78] {strides = array<i32: 12, 1>} : memref<24x64xf32, #tpu.memory_space<vmem>>, vector<2x64xf32>
    %85 = arith.maximumf %83, %84 : vector<2x64xf32>
    %c352 = arith.constant 352 : index
    %c0_79 = arith.constant 0 : index
    %86 = vector.load %arg1[%c352, %c0_79] : memref<672x64xf32, #tpu.memory_space<vmem>>, vector<64x64xf32>
    %cst_80 = arith.constant dense<0.000000e+00> : vector<2x64xf32>
    %87 = tpu.matmul %85, %86, %cst_80 {dimension_numbers = #tpu.dot_dimension_numbers<[1], [0], [0], [1], [0, 0, 1, 1], [], []>} : vector<2x64xf32>, vector<64x64xf32>, vector<2x64xf32> -> vector<2x64xf32>
    %88 = arith.addf %82, %87 : vector<2x64xf32>
    %c6 = arith.constant 6 : index
    %c0_81 = arith.constant 0 : index
    %89 = tpu.strided_load %arg5[%c6, %c0_81] {strides = array<i32: 12, 1>} : memref<24x64xf32, #tpu.memory_space<vmem>>, vector<2x64xf32>
    %c7 = arith.constant 7 : index
    %c0_82 = arith.constant 0 : index
    %90 = tpu.strided_load %arg5[%c7, %c0_82] {strides = array<i32: 12, 1>} : memref<24x64xf32, #tpu.memory_space<vmem>>, vector<2x64xf32>
    %91 = arith.maximumf %89, %90 : vector<2x64xf32>
    %c416 = arith.constant 416 : index
    %c0_83 = arith.constant 0 : index
    %92 = vector.load %arg1[%c416, %c0_83] : memref<672x64xf32, #tpu.memory_space<vmem>>, vector<64x64xf32>
    %cst_84 = arith.constant dense<0.000000e+00> : vector<2x64xf32>
    %93 = tpu.matmul %91, %92, %cst_84 {dimension_numbers = #tpu.dot_dimension_numbers<[1], [0], [0], [1], [0, 0, 1, 1], [], []>} : vector<2x64xf32>, vector<64x64xf32>, vector<2x64xf32> -> vector<2x64xf32>
    %94 = arith.addf %88, %93 : vector<2x64xf32>
    %c8_85 = arith.constant 8 : index
    %c0_86 = arith.constant 0 : index
    %95 = tpu.strided_load %arg5[%c8_85, %c0_86] {strides = array<i32: 12, 1>} : memref<24x64xf32, #tpu.memory_space<vmem>>, vector<2x64xf32>
    %c9 = arith.constant 9 : index
    %c0_87 = arith.constant 0 : index
    %96 = tpu.strided_load %arg5[%c9, %c0_87] {strides = array<i32: 12, 1>} : memref<24x64xf32, #tpu.memory_space<vmem>>, vector<2x64xf32>
    %97 = arith.maximumf %95, %96 : vector<2x64xf32>
    %c480 = arith.constant 480 : index
    %c0_88 = arith.constant 0 : index
    %98 = vector.load %arg1[%c480, %c0_88] : memref<672x64xf32, #tpu.memory_space<vmem>>, vector<64x64xf32>
    %cst_89 = arith.constant dense<0.000000e+00> : vector<2x64xf32>
    %99 = tpu.matmul %97, %98, %cst_89 {dimension_numbers = #tpu.dot_dimension_numbers<[1], [0], [0], [1], [0, 0, 1, 1], [], []>} : vector<2x64xf32>, vector<64x64xf32>, vector<2x64xf32> -> vector<2x64xf32>
    %100 = arith.addf %94, %99 : vector<2x64xf32>
    %c10 = arith.constant 10 : index
    %c0_90 = arith.constant 0 : index
    %101 = tpu.strided_load %arg5[%c10, %c0_90] {strides = array<i32: 12, 1>} : memref<24x64xf32, #tpu.memory_space<vmem>>, vector<2x64xf32>
    %c11 = arith.constant 11 : index
    %c0_91 = arith.constant 0 : index
    %102 = tpu.strided_load %arg5[%c11, %c0_91] {strides = array<i32: 12, 1>} : memref<24x64xf32, #tpu.memory_space<vmem>>, vector<2x64xf32>
    %103 = arith.maximumf %101, %102 : vector<2x64xf32>
    %c544 = arith.constant 544 : index
    %c0_92 = arith.constant 0 : index
    %104 = vector.load %arg1[%c544, %c0_92] : memref<672x64xf32, #tpu.memory_space<vmem>>, vector<64x64xf32>
    %cst_93 = arith.constant dense<0.000000e+00> : vector<2x64xf32>
    %105 = tpu.matmul %103, %104, %cst_93 {dimension_numbers = #tpu.dot_dimension_numbers<[1], [0], [0], [1], [0, 0, 1, 1], [], []>} : vector<2x64xf32>, vector<64x64xf32>, vector<2x64xf32> -> vector<2x64xf32>
    %106 = arith.addf %100, %105 : vector<2x64xf32>
    %107 = vector.broadcast %2 : vector<1x64xf32> to vector<2x64xf32>
    %108 = arith.addf %106, %107 : vector<2x64xf32>
    %cst_94 = arith.constant 0.000000e+00 : f32
    %109 = vector.broadcast %cst_94 : f32 to vector<2x64xf32>
    %110 = arith.maximumf %108, %109 : vector<2x64xf32>
    %c608 = arith.constant 608 : index
    %c0_95 = arith.constant 0 : index
    %111 = vector.load %arg1[%c608, %c0_95] : memref<672x64xf32, #tpu.memory_space<vmem>>, vector<64x64xf32>
    %cst_96 = arith.constant dense<0.000000e+00> : vector<2x64xf32>
    %112 = tpu.matmul %110, %111, %cst_96 {dimension_numbers = #tpu.dot_dimension_numbers<[1], [0], [0], [1], [0, 0, 1, 1], [], []>} : vector<2x64xf32>, vector<64x64xf32>, vector<2x64xf32> -> vector<2x64xf32>
    %113 = vector.broadcast %3 : vector<1x64xf32> to vector<2x64xf32>
    %114 = arith.addf %112, %113 : vector<2x64xf32>
    %115 = vector.extract_strided_slice %114 {offsets = [0, 0], sizes = [2, 26], strides = [1, 1]} : vector<2x64xf32> to vector<2x26xf32>
    %c0_97 = arith.constant 0 : index
    %c0_98 = arith.constant 0 : index
    %116 = vector.load %arg2[%c0_97, %c0_98] : memref<2x26xf32, #tpu.memory_space<vmem>>, vector<2x26xf32>
    tpu.vector_store %arg2[%c0_97, %c0_98], %115 {strides = array<i32>} : memref<2x26xf32, #tpu.memory_space<vmem>>, vector<2x26xf32>,
    return
  }
}

</mosaic_0001>

<bundles_post_ra>
// kernel: net_forward.1
= control target key start
LH: loop header
LB: loop body
LE: loop exit
PB: predicated region body
PF: predicated region fallthrough
CT: control target
= control target key end

     0   :  { %vm65_vm0 = vcmask 1043456   ;;  %v2532_v2 = vmov 0.0   ;;  %vm2533_vm1 = vmmov 0   ;;  %vm55_vm2 = vcmask 31744   ;;  %s3043_s0 = inlined_call_operand.vmem [shape: f32[52,4], index: 0, kind: input, shape index: {}]   ;;  %s3044_s1 = inlined_call_operand.vmem [shape: f32[672,64], index: 1, kind: input, shape index: {}]   ;;  %s3045_s2 = inlined_call_operand.hbm [shape: f32[2,26], index: 2, kind: output, shape index: {}]  }
   0x1   :  { %v17_v0 = vld [vmem:[%s3044_s1 + $0x10] sm:$0xf]  ;;  %2494 = vmatprep.subr.mxu1 %v2532_v2  ;;  %2006 = vmatprep.mubr.msk.f32.mxu1 %vm2533_vm1, %v2532_v2  ;;  %v16_v3 = vld [vmem:[%s3044_s1 + $0x8] sm:$0xf]  ;;  %v18_v6 = vld [vmem:[%s3044_s1 + $0x18] sm:$0xf] }
   0x2   :  { %v53_v1 = vld [vmem:[%s3043_s0 + $0x9] sm:$0xff]  ;;  %2495 = vmatpush3.msk.msra.mxu1 %vm65_vm0, %v17_v0  ;;  %2001 = vmatprep.subr.mxu0 %v2532_v2  ;;  %v52_v4 = vld [vmem:[%s3043_s0 + $0x1] sm:$0xff]  ;;  %v54_v5 = vld [vmem:[%s3043_s0 + $0x11] sm:$0xff] }
   0x3   :  { %2007 = vmatmul.mubr.msk.f32.vlgmr.msra.gmra.mrb[0].mxu1 %vm55_vm2, %v53_v1  ;;  %2012 = vmatprep.subr.mxu1 %v2532_v2  ;;  %v241_v7 = vld [vmem:[%s3043_s0 + $0x2] sm:$0xff] }
   0x4   :  { %2013 = vmatpush3.msk.msra.mxu1 %vm65_vm0, %v16_v3  ;;  %2009 = vmatprep.mubr.msk.f32.mxu1 %vm2533_vm1, %v2532_v2 }
   0x5   :  { %2002 = vmatpush3.msk.msra.mxu0 %vm65_vm0, %v17_v0  ;;  %2003 = vmatprep.mubr.msk.f32.mxu0 %vm2533_vm1, %v2532_v2 }
   0x6   :  { %2004 = vmatmul.mubr.msk.f32.vlgmr.msra.gmra.mrb[0].mxu0 %vm55_vm2, %v52_v4  ;;  %2023 = vmatprep.subr.mxu0 %v2532_v2 }
   0x7   :  { %2010 = vmatmul.mubr.msk.f32.gmra.mrb[2].mxu1 %vm55_vm2, %v54_v5  ;;  %2024 = vmatpush3.msk.msra.mxu0 %vm65_vm0, %v18_v6 }
   0x8   :  { %7 = vsyncpa [#allocation6], 0  ;;  %2014 = vmatprep.mubr.msk.f32.mxu1 %vm2533_vm1, %v2532_v2  ;;  %v49_v8 = vld [vmem:[%s3043_s0] sm:$0xff]  ;;  %2025 = vmatprep.mubr.msk.f32.mxu0 %vm2533_vm1, %v2532_v2  ;;  %v242_v9 = vld [vmem:[%s3043_s0 + $0xa] sm:$0xff]  ;;  %vm43_vm3 = vcmask 523264   ;;  %vm47_vm4 = vcmask 519168  }
   0x9   :  { %2034 = vmatprep.subr.mxu1 %v2532_v2  ;;  %2045 = vmatprep.subr.mxu0 %v2532_v2  ;;  %v50_v10 = vld [vmem:[%s3043_s0 + $0x8] sm:$0xff]  ;;  %v243_v11 = vld [vmem:[%s3043_s0 + $0x12] sm:$0xff]  ;;  %v352_v13 = vld [vmem:[%s3043_s0 + $0x1a] sm:$0xff]  ;;  %44 = vst.msk [vmem:[#allocation3] sm:$0xff] %vm43_vm3, %v2532_v2  ;;  %s2535_s17 = smov [#allocation5]   ;;  %vm1791_vm5 = vcmask 205824  }
   0xa   :  { %2026 = vmatmul.mubr.msk.f32.vlgmr.msra.gmra.mrb[2].mxu0 %vm55_vm2, %v241_v7  ;;  %v51_v12 = vld [vmem:[%s3043_s0 + $0x10] sm:$0xff]  ;;  %v355_v14 = vld [vmem:[%s3043_s0 + $0x1b] sm:$0xff]  ;;  %v356_v16 = vld [vmem:[%s3043_s0 + $0x23] sm:$0xff]  ;;  %45 = vst.msk [vmem:[#allocation3 + $0x8] sm:$0xff] %vm43_vm3, %v2532_v2  ;;  %s1799_s18 = sshll.u32 %s2535_s17, 4  ;;  %s1800_s18 = int_to_ptr.vmem [resolvable:$true] %s1799_s18 }
   0xb   :  { %2015 = vmatmul.mubr.msk.f32.vlgmr.msra.gmra.mrb[4].mxu1 %vm55_vm2, %v49_v8  ;;  %2028 = vmatprep.mubr.msk.f32.mxu0 %vm2533_vm1, %v2532_v2  ;;  %v353_v15 = vld [vmem:[%s3043_s0 + $0x22] sm:$0xff]  ;;  %v354_v17 = vld [vmem:[%s3043_s0 + $0x2a] sm:$0xff]  ;;  %46 = vst.msk [vmem:[#allocation3 + $0x10] sm:$0xff] %vm43_vm3, %v2532_v2  ;;  %v30_v26 = vld [vmem:[%s3044_s1 + $0x78] sm:$0xff]  ;;  %s2508_s19 = scalar_lea.vmem %s1800_s18, 32  ;;  %p2513_p1 = scmp.lt.s32.totalorder %s1800_s18, %s1800_s18 }
   0xc   :  { %2035 = vmatpush3.msk.msra.mxu1 %vm65_vm0, %v17_v0  ;;  %2017 = vmatprep.mubr.msk.f32.mxu1 %vm2533_vm1, %v2532_v2  ;;  %v357_v18 = vld [vmem:[%s3043_s0 + $0x2b] sm:$0xff]  ;;  %v536_v19 = vld [vmem:[%s3043_s0 + $0x1c] sm:$0xff]  ;;  %48 = vst.msk [vmem:[#allocation3 + $0x18] sm:$0xf] %vm47_vm4, %v2532_v2  ;;  %p2509_p0 = scmp.ne.s32.totalorder %s1800_s18, %s2508_s19  ;;  %p2514_p2 = scmp.lt.s32.totalorder %s2508_s19, %s2508_s19 }
   0xd   :  { %2046 = vmatpush3.msk.msra.mxu0 %vm65_vm0, %v16_v3  ;;  %2056 = vmatprep.subr.mxu1 %v2532_v2  ;;  %v537_v20 = vld [vmem:[%s3043_s0 + $0x24] sm:$0xff]  ;;  %v538_v21 = vld [vmem:[%s3043_s0 + $0x2c] sm:$0xff]  ;;  %v34_v32 = vld [vmem:[%s3044_s1 + $0x98] sm:$0xff] }
   0xe   :  { %2029 = vmatmul.mubr.msk.f32.gmra.mrb[4].mxu0 %vm55_vm2, %v242_v9  ;;  %v27_v22 = vld [vmem:[%s3044_s1 + $0x60] sm:$0xff]  ;;  %v28_v23 = vld [vmem:[%s3044_s1 + $0x68] sm:$0xff]  ;;  %v29_v25 = vld [vmem:[%s3044_s1 + $0x70] sm:$0xff]  ;;  %p2515_p3 = por %p2514_p2, %p2513_p1 }
   0xf   :  { %2018 = vmatmul.mubr.msk.f32.gmra.mrb[6].mxu1 %vm55_vm2, %v50_v10  ;;  %2031 = vmatprep.mubr.msk.f32.mxu0 %vm2533_vm1, %v2532_v2  ;;  %v2314_v24 = vpack.c.bf16 %v28_v23, %v27_v22  ;;  %v2318_v27 = vpack.c.bf16 %v30_v26, %v29_v25  ;;  %v31_v28 = vld [vmem:[%s3044_s1 + $0x80] sm:$0xff]  ;;  %v32_v29 = vld [vmem:[%s3044_s1 + $0x88] sm:$0xff]  ;;  %v33_v31 = vld [vmem:[%s3044_s1 + $0x90] sm:$0xff] }
  0x10   :  { %2020 = vmatprep.mubr.msk.f32.mxu1 %vm2533_vm1, %v2532_v2  ;;  %v2322_v30 = vpack.c.bf16 %v32_v29, %v31_v28  ;;  %v2326_v33 = vpack.c.bf16 %v34_v32, %v33_v31  ;;  %v19_v34 = vld [vmem:[%s3044_s1 + $0x20] sm:$0xff]  ;;  %v20_v35 = vld [vmem:[%s3044_s1 + $0x28] sm:$0xff]  ;;  %p2516_p4 = pnand %p2515_p3, %p2509_p0 }
  0x11   :  { %2315 = vmatprep.subr.bf16.mxu0 %v2314_v24  ;;  %v2720_v36 = vpack.c.bf16 %v20_v35, %v19_v34  ;;  %v2727_v48 = vld [vmem:[%s3044_s1] ss:$0 sm:$0xff]  ;;  %v21_v35 = vld [vmem:[%s3044_s1 + $0x30] sm:$0xff] }
  0x12   :  { %2032 = vmatmul.mubr.msk.f32.gmra.mrb[6].mxu0 %vm55_vm2, %v243_v11 }
  0x13   :  { %2021 = vmatmul.mubr.msk.f32.gmra.mrb[8].mxu1 %vm55_vm2, %v51_v12  ;;  %2047 = vmatprep.mubr.msk.f32.mxu0 %vm2533_vm1, %v2532_v2 }
  0x14   :  { %2036 = vmatprep.mubr.msk.f32.mxu1 %vm2533_vm1, %v2532_v2 }
  0x16   :  { %2048 = vmatmul.mubr.msk.f32.vlgmr.msra.gmra.mrb[8].mxu0 %vm55_vm2, %v352_v13 }
  0x17   :  { %2037 = vmatmul.mubr.msk.f32.vlgmr.msra.gmra.mrb[10].mxu1 %vm55_vm2, %v355_v14  ;;  %2050 = vmatprep.mubr.msk.f32.mxu0 %vm2533_vm1, %v2532_v2 }
  0x18   :  { %2057 = vmatpush3.msk.msra.mxu1 %vm65_vm0, %v18_v6  ;;  %2039 = vmatprep.mubr.msk.f32.mxu1 %vm2533_vm1, %v2532_v2 }
  0x19   :  { %2363 = vmatprep.subr.bf16.mxu1 %v2314_v24  ;;  %2317 = vmatpush3.bf16.msra.mxu0 %v2314_v24 }
  0x1a   :  { %2051 = vmatmul.mubr.msk.f32.gmra.mrb[10].mxu0 %vm55_vm2, %v353_v15  ;;  %2319 = vmatprep.subr.bf16.mxu0 %v2318_v27 }
  0x1b   :  { %2040 = vmatmul.mubr.msk.f32.gmra.mrb[12].mxu1 %vm55_vm2, %v356_v16  ;;  %2053 = vmatprep.mubr.msk.f32.mxu0 %vm2533_vm1, %v2532_v2 }
  0x1c   :  { %2042 = vmatprep.mubr.msk.f32.mxu1 %vm2533_vm1, %v2532_v2 }
  0x1d   :  { %2321 = vmatpush3.bf16.msra.mxu0 %v2318_v27 }
  0x1e   :  { %2054 = vmatmul.mubr.msk.f32.gmra.mrb[12].mxu0 %vm55_vm2, %v354_v17  ;;  %2323 = vmatprep.subr.bf16.mxu0 %v2322_v30 }
  0x1f   :  { %2043 = vmatmul.mubr.msk.f32.gmra.mrb[14].mxu1 %vm55_vm2, %v357_v18 }
  0x20   :  { %2058 = vmatprep.mubr.msk.f32.mxu1 %vm2533_vm1, %v2532_v2 }
  0x21   :  { %2325 = vmatpush3.bf16.msra.mxu0 %v2322_v30 }
  0x22   :  { %2327 = vmatprep.subr.bf16.mxu0 %v2326_v33 }
  0x23   :  { %2059 = vmatmul.mubr.msk.f32.vlgmr.msra.gmra.mrb[16].mxu1 %vm55_vm2, %v536_v19 }
  0x24   :  { %2061 = vmatprep.mubr.msk.f32.mxu1 %vm2533_vm1, %v2532_v2  ;;  %2365 = vmatpush3.bf16.msra.mxu1 %v2314_v24 }
  0x25   :  { %2367 = vmatprep.subr.bf16.mxu1 %v2318_v27  ;;  %2329 = vmatpush3.bf16.msra.mxu0 %v2326_v33 }
  0x26   :  { %2331 = vmatprep.subr.bf16.mxu0 %v2720_v36 }
  0x27   :  { %2062 = vmatmul.mubr.msk.f32.gmra.mrb[18].mxu1 %vm55_vm2, %v537_v20 }
  0x28   :  { %2064 = vmatprep.mubr.msk.f32.mxu1 %vm2533_vm1, %v2532_v2  ;;  %2369 = vmatpush3.bf16.msra.mxu1 %v2318_v27 }
  0x29   :  { %2371 = vmatprep.subr.bf16.mxu1 %v2322_v30 }
  0x2b   :  { %2065 = vmatmul.mubr.msk.f32.gmra.mrb[20].mxu1 %vm55_vm2, %v538_v21 }
  0x2c   :  { %2373 = vmatpush3.bf16.msra.mxu1 %v2322_v30 }
  0x2d   :  { %2375 = vmatprep.subr.bf16.mxu1 %v2326_v33 }
  0x30   :  { %2377 = vmatpush3.bf16.msra.mxu1 %v2326_v33 }
  0x31   :  { %2379 = vmatprep.subr.bf16.mxu1 %v2720_v36 }
  0xd6   :  { %v140_v37 = vpop.f32.mrb[0].mxu1 }
  0xd7   :  { %v2008_v38 = vpop.f32.mrb[1].mxu1 }
  0xd9   :  { %v135_v39 = vpop.f32.mrb[0].mxu0 }
  0xda   :  { %v145_v40 = vpop.f32.mrb[2].mxu1  ;;  %v2005_v41 = vpop.f32.mrb[1].mxu0 }
  0xdb   :  { %v2011_v42 = vpop.f32.mrb[3].mxu1 }
  0xdd   :  { %v322_v43 = vpop.f32.mrb[2].mxu0 }
  0xde   :  { %v227_v44 = vpop.f32.mrb[4].mxu1  ;;  %v2027_v45 = vpop.f32.mrb[3].mxu0 }
  0xdf   :  { %v228_v46 = vadd.f32 %v227_v44, %v135_v39  ;;  %v2016_v47 = vpop.f32.mrb[5].mxu1  ;;  %v23_v45 = vld [vmem:[%s3044_s1 + $0x40] sm:$0xff] }
  0xe1   :  { %v336_v49 = vadd.f32 %v322_v43, %v228_v46  ;;  %v327_v50 = vpop.f32.mrb[4].mxu0  ;;  %v24_v46 = vld [vmem:[%s3044_s1 + $0x48] sm:$0xff] }
  0xe2   :  { %v232_v51 = vpop.f32.mrb[6].mxu1  ;;  %v2030_v52 = vpop.f32.mrb[5].mxu0 }
  0xe3   :  { %v343_v53 = vadd.f32 %v2727_v48, %v336_v49  ;;  %v233_v54 = vadd.f32 %v232_v51, %v140_v37  ;;  %v2019_v55 = vpop.f32.mrb[7].mxu1  ;;  %v22_v37 = vld [vmem:[%s3044_s1 + $0x38] sm:$0xff]  ;;  %v2338_v51 = vpack.c.bf16 %v24_v46, %v23_v45  ;;  %v25_v52 = vld [vmem:[%s3044_s1 + $0x50] sm:$0xff] }
  0xe4   :  { %v2334_v43 = vpack.c.bf16 %v22_v37, %v21_v35  ;;  %v1204_v35 = vld [vmem:[%s3044_s1 + $0x150] sm:$0xff]  ;;  %v1205_v37 = vld [vmem:[%s3044_s1 + $0x158] sm:$0xff] }
  0xe5   :  { %v346_v56 = vmax.f32 %v343_v53, 0.0  ;;  %v337_v57 = vadd.f32 %v327_v50, %v233_v54  ;;  %v332_v58 = vpop.f32.mrb[6].mxu0  ;;  %v26_v53 = vld [vmem:[%s3044_s1 + $0x58] sm:$0xff]  ;;  %v35_v54 = vld [vmem:[%s3044_s1 + $0xa0] sm:$0xff] }
  0xe6   :  { %v237_v59 = vpop.f32.mrb[8].mxu1  ;;  %v2033_v60 = vpop.f32.mrb[7].mxu0 }
  0xe7   :  { %349 = vst.msk [vmem:[#allocation2] sm:$0xff] %vm43_vm3, %v346_v56  ;;  %v344_v61 = vadd.f32 %v2727_v48, %v337_v57  ;;  %v238_v62 = vadd.f32 %v237_v59, %v145_v40  ;;  %v2022_v63 = vpop.f32.mrb[9].mxu1  ;;  %v36_v57 = vld [vmem:[%s3044_s1 + $0xa8] sm:$0xff]  ;;  %v37_v60 = vld [vmem:[%s3044_s1 + $0xb0] sm:$0xff] }
  0xe8   :  { %v2346_v59 = vpack.c.bf16 %v36_v57, %v35_v54  ;;  %v1358_v57 = vld [vmem:[%s3044_s1 + $0x168] sm:$0xff] }
  0xe9   :  { %v347_v0 = vmax.f32 %v344_v61, 0.0  ;;  %v338_v1 = vadd.f32 %v332_v58, %v238_v62  ;;  %v522_v3 = vpop.f32.mrb[8].mxu0  ;;  %v38_v61 = vld [vmem:[%s3044_s1 + $0xb8] sm:$0xff] }
  0xea   :  { %v433_v4 = vpop.f32.mrb[10].mxu1  ;;  %v2049_v5 = vpop.f32.mrb[9].mxu0 }
  0xeb   :  { %350 = vst.msk [vmem:[#allocation2 + $0x8] sm:$0xff] %vm43_vm3, %v347_v0  ;;  %v345_v6 = vadd.f32 %v2727_v48, %v338_v1  ;;  %v2038_v7 = vpop.f32.mrb[11].mxu1  ;;  %v523_v8 = vadd.f32 %v522_v3, %v433_v4  ;;  %v2350_v1 = vpack.c.bf16 %v38_v61, %v37_v60  ;;  %v39_v4 = vld [vmem:[%s3044_s1 + $0xc0] sm:$0xff]  ;;  %v40_v5 = vld [vmem:[%s3044_s1 + $0xc8] sm:$0xff]  ;;  %v1359_v60 = vld [vmem:[%s3044_s1 + $0x170] sm:$0xff] }
  0xec   :  { %v1360_v61 = vld [vmem:[%s3044_s1 + $0x178] sm:$0xff] }
  0xed   :  { %v348_v9 = vmax.f32 %v345_v6, 0.0  ;;  %v527_v10 = vpop.f32.mrb[10].mxu0 }
  0xee   :  { %v438_v11 = vpop.f32.mrb[12].mxu1  ;;  %v2052_v12 = vpop.f32.mrb[11].mxu0 }
  0xef   :  { %351 = vst.msk [vmem:[#allocation2 + $0x10] sm:$0xff] %vm43_vm3, %v348_v9  ;;  %v2041_v13 = vpop.f32.mrb[13].mxu1  ;;  %v528_v14 = vadd.f32 %v527_v10, %v438_v11  ;;  %v41_v9 = vld [vmem:[%s3044_s1 + $0xd0] sm:$0xff]  ;;  %v42_v10 = vld [vmem:[%s3044_s1 + $0xd8] sm:$0xff] }
  0xf0   :  { %v2358_v13 = vpack.c.bf16 %v42_v10, %v41_v9  ;;  %v2438_v9 = vpack.c.bf16 %v1360_v61, %v1359_v60  ;;  %v1706_v60 = vld [vmem:[%s3044_s1 + $0x260] sm:$0xff]  ;;  %v1707_v61 = vld [vmem:[%s3044_s1 + $0x268] sm:$0xff] }
  0xf1   :  { %v532_v15 = vpop.f32.mrb[12].mxu0 }
  0xf2   :  { %v640_v16 = vld [vmem:[#allocation2] ss:$2 sm:$0xff]  ;;  %v644_v17 = vld [vmem:[#allocation2 + $0x1] ss:$2 sm:$0xff]  ;;  %v443_v18 = vpop.f32.mrb[14].mxu1  ;;  %v2055_v19 = vpop.f32.mrb[13].mxu0 }
  0xf3   :  { %v647_v20 = vmax.f32 %v640_v16, %v644_v17  ;;  %v2044_v21 = vpop.f32.mrb[15].mxu1  ;;  %v533_v22 = vadd.f32 %v532_v15, %v443_v18  ;;  %v2534_v17 = vmov 0.0|0.0   ;;  %v1198_v18 = vld [vmem:[%s3044_s1 + $0x120] sm:$0xff]  ;;  %v1199_v19 = vld [vmem:[%s3044_s1 + $0x128] sm:$0xff] }
  0xf4   :  { %v2411_v21 = vpack.c.bf16 %v1199_v19, %v1198_v18  ;;  %v1364_v18 = vld [vmem:[%s3044_s1 + $0x198] sm:$0xff]  ;;  %v1450_v19 = vld [vmem:[%s3044_s1 + $0x1d0] sm:$0xff] }
  0xf5   :  { %649 = vst.msk [vmem:[#allocation3 + $0x1] sm:$0xff] %vm43_vm3, %v647_v20  ;;  %v1185_v20 = vld [vmem:[%s3044_s1 + $0xe0] sm:$0xff] }
  0xf6   :  { %v642_v23 = vld [vmem:[#allocation2 + $0x10] ss:$2 sm:$0xf]  ;;  %v646_v24 = vld [vmem:[#allocation2 + $0x11] ss:$2 sm:$0xf] }
  0xf7   :  { %v648_v25 = vmax.f32 %v642_v23, %v646_v24  ;;  %v614_v26 = vpop.f32.mrb[16].mxu1  ;;  %v1200_v24 = vld [vmem:[%s3044_s1 + $0x130] sm:$0xff] }
  0xf8   :  { %v628_v27 = vadd.f32 %v614_v26, %v523_v8  ;;  %v2060_v28 = vpop.f32.mrb[17].mxu1  ;;  %v2354_v8 = vpack.c.bf16 %v40_v5, %v39_v4  ;;  %v1187_v26 = vld [vmem:[%s3044_s1 + $0xf0] sm:$0xff] }
  0xf9   :  { %650 = vst.msk [vmem:[#allocation3 + $0x9] sm:$0xf] %vm47_vm4, %v648_v25  ;;  %v1201_v25 = vld [vmem:[%s3044_s1 + $0x138] sm:$0xff] }
  0xfa   :  { %v631_v29 = vadd.f32 %v2727_v48, %v628_v27  ;;  %v619_v30 = vpop.f32.mrb[18].mxu1  ;;  %v2414_v27 = vpack.c.bf16 %v1201_v25, %v1200_v24  ;;  %v1188_v28 = vld [vmem:[%s3044_s1 + $0xf8] sm:$0xff]  ;;  %v1532_v24 = vld [vmem:[%s3044_s1 + $0x1e8] sm:$0xff]  ;;  %v1618_v25 = vld [vmem:[%s3044_s1 + $0x220] sm:$0xff] }
  0xfb   :  { %v629_v31 = vadd.f32 %v619_v30, %v528_v14  ;;  %v2063_v32 = vpop.f32.mrb[19].mxu1  ;;  %v1202_v30 = vld [vmem:[%s3044_s1 + $0x140] sm:$0xff] }
  0xfc   :  { %v634_v33 = vmax.f32 %v631_v29, 0.0  ;;  %v665_v34 = vld [vmem:[#allocation3 + $0x1] sm:$0xff]  ;;  %v2426_v29 = vpack.c.bf16 %v1188_v28, %v1187_v26  ;;  %v1189_v32 = vld [vmem:[%s3044_s1 + $0x100] sm:$0xff]  ;;  %v1619_v26 = vld [vmem:[%s3044_s1 + $0x228] sm:$0xff] }
  0xfd   :  { %v632_v38 = vadd.f32 %v2727_v48, %v629_v31  ;;  %2083 = vmatprep.mubr.msk.f32.mxu0 %vm43_vm3, %v665_v34  ;;  %v663_v49 = vld [vmem:[#allocation3] sm:$0xff]  ;;  %v1203_v31 = vld [vmem:[%s3044_s1 + $0x148] sm:$0xff] }
  0xfe   :  { %637 = vst.msk [vmem:[#allocation2 + $0x18] sm:$0xff] %vm43_vm3, %v634_v33  ;;  %v624_v39 = vpop.f32.mrb[20].mxu1  ;;  %v2417_v33 = vpack.c.bf16 %v1203_v31, %v1202_v30  ;;  %v1190_v34 = vld [vmem:[%s3044_s1 + $0x108] sm:$0xff] }
  0xff   :  { %v635_v40 = vmax.f32 %v632_v38, 0.0  ;;  %v630_v41 = vadd.f32 %v624_v39, %v533_v22  ;;  %v2066_v42 = vpop.f32.mrb[21].mxu1  ;;  %v1186_v22 = vld [vmem:[%s3044_s1 + $0xe8] sm:$0xff]  ;;  %v2429_v38 = vpack.c.bf16 %v1190_v34, %v1189_v32  ;;  %v1191_v39 = vld [vmem:[%s3044_s1 + $0x110] sm:$0xff] }
 0x100   :  { %v666_v44 = vld [vmem:[#allocation3 + $0x9] sm:$0xf]  ;;  %v2423_v23 = vpack.c.bf16 %v1186_v22, %v1185_v20  ;;  %v1531_v22 = vld [vmem:[%s3044_s1 + $0x1e0] sm:$0xff]  ;;  %v1533_v34 = vld [vmem:[%s3044_s1 + $0x1f0] sm:$0xff] }
 0x101   :  { %638 = vst.msk [vmem:[#allocation2 + $0x20] sm:$0xff] %vm43_vm3, %v635_v40  ;;  %v633_v47 = vadd.f32 %v2727_v48, %v630_v41  ;;  %2084 = vmatmul.mubr.msk.f32.vlgmr.msra.gmra.mrb[14].mxu0 %vm43_vm3, %v666_v44  ;;  %v2342_v48 = vpack.c.bf16 %v26_v53, %v25_v52  ;;  %v664_v3 = vld [vmem:[#allocation3 + $0x8] sm:$0xf]  ;;  %v2420_v41 = vpack.c.bf16 %v1205_v37, %v1204_v35 }
 0x102   :  { %2333 = vmatpush3.bf16.msra.mxu0 %v2720_v36  ;;  %2102 = vmatprep.mubr.msk.f32.mxu0 %vm43_vm3, %v663_v49  ;;  %v829_v6 = vld [vmem:[#allocation3 + $0x2] sm:$0xff]  ;;  %v830_v14 = vld [vmem:[#allocation3 + $0xa] sm:$0xf]  ;;  %v2459_v31 = vpack.c.bf16 %v1532_v24, %v1531_v22  ;;  %v1851_v22 = vld [vmem:[%s3044_s1 + $0x2] ss:$0 sm:$0xff] }
 0x103   :  { %v636_v50 = vmax.f32 %v633_v47, 0.0  ;;  %2335 = vmatprep.subr.bf16.mxu0 %v2334_v43  ;;  %v1192_v40 = vld [vmem:[%s3044_s1 + $0x118] sm:$0xff] }
 0x104   :  { %v2432_v42 = vpack.c.bf16 %v1192_v40, %v1191_v39  ;;  %v1451_v20 = vld [vmem:[%s3044_s1 + $0x1d8] sm:$0xff] }
 0x105   :  { %639 = vst.msk [vmem:[#allocation2 + $0x28] sm:$0xff] %vm43_vm3, %v636_v50  ;;  %v1534_v35 = vld [vmem:[%s3044_s1 + $0x1f8] sm:$0xff] }
 0x106   :  { %2337 = vmatpush3.bf16.msra.mxu0 %v2334_v43  ;;  %v1621_v39 = vld [vmem:[%s3044_s1 + $0x238] sm:$0xff]  ;;  %v2462_v40 = vpack.c.bf16 %v1534_v35, %v1533_v34 }
 0x107   :  { %2339 = vmatprep.subr.bf16.mxu0 %v2338_v51 }
 0x108   :  { %v652_v55 = vld [vmem:[#allocation2 + $0x18] ss:$2 sm:$0xff]  ;;  %v656_v56 = vld [vmem:[#allocation2 + $0x19] ss:$2 sm:$0xff] }
 0x109   :  { %v659_v58 = vmax.f32 %v652_v55, %v656_v56  ;;  %v1357_v56 = vld [vmem:[%s3044_s1 + $0x160] sm:$0xff] }
 0x10a   :  { %2341 = vmatpush3.bf16.msra.mxu0 %v2338_v51 }
 0x10b   :  { %661 = vst.msk [vmem:[#allocation3 + $0xf] sm:$0xff] %vm43_vm3, %v659_v58  ;;  %2343 = vmatprep.subr.bf16.mxu0 %v2342_v48  ;;  %v1444_v58 = vld [vmem:[%s3044_s1 + $0x1a0] sm:$0xff] }
 0x10c   :  { %v654_v62 = vld [vmem:[#allocation2 + $0x28] ss:$2 sm:$0xf]  ;;  %v658_v63 = vld [vmem:[#allocation2 + $0x29] ss:$2 sm:$0xf] }
 0x10d   :  { %v660_v0 = vmax.f32 %v654_v62, %v658_v63 }
 0x10e   :  { %2345 = vmatpush3.bf16.msra.mxu0 %v2342_v48 }
 0x10f   :  { %662 = vst.msk [vmem:[#allocation3 + $0x17] sm:$0xf] %vm47_vm4, %v660_v0  ;;  %2347 = vmatprep.subr.bf16.mxu0 %v2346_v59  ;;  %v2435_v0 = vpack.c.bf16 %v1358_v57, %v1357_v56 }
 0x111   :  { %2103 = vmatmul.mubr.msk.f32.vlgmr.msra.gmra.mrb[14].mxu0 %vm43_vm3, %v664_v3 }
 0x112   :  { %2349 = vmatpush3.bf16.msra.mxu0 %v2346_v59  ;;  %2121 = vmatprep.mubr.msk.f32.mxu0 %vm43_vm3, %v829_v6  ;;  %v926_v7 = vld [vmem:[#allocation3 + $0xf] sm:$0xff] }
 0x113   :  { %2140 = vmatprep.mubr.msk.f32.mxu1 %vm43_vm3, %v926_v7  ;;  %2351 = vmatprep.subr.bf16.mxu0 %v2350_v1  ;;  %v924_v12 = vld [vmem:[#allocation3 + $0xe] sm:$0xff]  ;;  %v1446_v7 = vld [vmem:[%s3044_s1 + $0x1b0] sm:$0xff] }
 0x116   :  { %2353 = vmatpush3.bf16.msra.mxu0 %v2350_v1  ;;  %v927_v11 = vld [vmem:[#allocation3 + $0x17] sm:$0xf] }
 0x117   :  { %2141 = vmatmul.mubr.msk.f32.vlgmr.msra.gmra.mrb[22].mxu1 %vm43_vm3, %v927_v11  ;;  %2355 = vmatprep.subr.bf16.mxu0 %v2354_v8  ;;  %v925_v15 = vld [vmem:[#allocation3 + $0x16] sm:$0xf] }
 0x118   :  { %2381 = vmatpush3.bf16.msra.mxu1 %v2720_v36  ;;  %2159 = vmatprep.mubr.msk.f32.mxu1 %vm43_vm3, %v924_v12  ;;  %v1090_v36 = vld [vmem:[#allocation3 + $0x10] sm:$0xff]  ;;  %v1091_v16 = vld [vmem:[#allocation3 + $0x18] sm:$0xf] }
 0x119   :  { %2383 = vmatprep.subr.bf16.mxu1 %v2334_v43  ;;  %v1361_v11 = vld [vmem:[%s3044_s1 + $0x180] sm:$0xff]  ;;  %v1362_v12 = vld [vmem:[%s3044_s1 + $0x188] sm:$0xff] }
 0x11a   :  { %2357 = vmatpush3.bf16.msra.mxu0 %v2354_v8 }
 0x11b   :  { %2359 = vmatprep.subr.bf16.mxu0 %v2358_v13 }
 0x11c   :  { %2385 = vmatpush3.bf16.msra.mxu1 %v2334_v43  ;;  %v1838_v43 = vld [vmem:[%s3044_s1 + $0x1] ss:$0 sm:$0xff] }
 0x11d   :  { %2387 = vmatprep.subr.bf16.mxu1 %v2338_v51 }
 0x11e   :  { %2361 = vmatpush3.bf16.msra.mxu0 %v2358_v13 }
 0x11f   :  { %2410 = vmatprep.subr.bf16.mxu0 %v2534_v17 }
 0x120   :  { %2389 = vmatpush3.bf16.msra.mxu1 %v2338_v51 }
 0x121   :  { %2122 = vmatmul.mubr.msk.f32.vlgmr.msra.gmra.mrb[14].mxu0 %vm43_vm3, %v830_v14  ;;  %2391 = vmatprep.subr.bf16.mxu1 %v2342_v48  ;;  %v1449_v14 = vld [vmem:[%s3044_s1 + $0x1c8] sm:$0xff] }
 0x122   :  { %2197 = vmatprep.mubr.msk.f32.mxu0 %vm2533_vm1, %v2532_v2  ;;  %2412 = vmatpush3.bf16.msra.mxu0 %v2411_v21 }
 0x123   :  { %2413 = vmatprep.subr.bf16.mxu0 %v2534_v17 }
 0x124   :  { %2393 = vmatpush3.bf16.msra.mxu1 %v2342_v48 }
 0x125   :  { %2395 = vmatprep.subr.bf16.mxu1 %v2346_v59 }
 0x126   :  { %2415 = vmatpush3.bf16.msra.mxu0 %v2414_v27 }
 0x127   :  { %2160 = vmatmul.mubr.msk.f32.vlgmr.msra.gmra.mrb[22].mxu1 %vm43_vm3, %v925_v15  ;;  %2416 = vmatprep.subr.bf16.mxu0 %v2534_v17  ;;  %v2441_v15 = vpack.c.bf16 %v1362_v12, %v1361_v11 }
 0x128   :  { %2397 = vmatpush3.bf16.msra.mxu1 %v2346_v59  ;;  %2178 = vmatprep.mubr.msk.f32.mxu1 %vm43_vm3, %v1090_v36  ;;  %v1445_v59 = vld [vmem:[%s3044_s1 + $0x1a8] sm:$0xff] }
 0x129   :  { %2399 = vmatprep.subr.bf16.mxu1 %v2350_v1  ;;  %v2447_v5 = vpack.c.bf16 %v1445_v59, %v1444_v58 }
 0x12a   :  { %2418 = vmatpush3.bf16.msra.mxu0 %v2417_v33  ;;  %v2471_v33 = vpack.c.bf16 %v1619_v26, %v1618_v25 }
 0x12b   :  { %2419 = vmatprep.subr.bf16.mxu0 %v2534_v17 }
 0x12c   :  { %2401 = vmatpush3.bf16.msra.mxu1 %v2350_v1 }
 0x12d   :  { %2403 = vmatprep.subr.bf16.mxu1 %v2354_v8 }
 0x12e   :  { %2421 = vmatpush3.bf16.msra.mxu0 %v2420_v41 }
 0x12f   :  { %2434 = vmatprep.subr.bf16.mxu0 %v2534_v17 }
 0x130   :  { %2405 = vmatpush3.bf16.msra.mxu1 %v2354_v8  ;;  %v1447_v8 = vld [vmem:[%s3044_s1 + $0x1b8] sm:$0xff] }
 0x131   :  { %2407 = vmatprep.subr.bf16.mxu1 %v2358_v13  ;;  %v2450_v10 = vpack.c.bf16 %v1447_v8, %v1446_v7 }
 0x134   :  { %2409 = vmatpush3.bf16.msra.mxu1 %v2358_v13  ;;  %v1448_v13 = vld [vmem:[%s3044_s1 + $0x1c0] sm:$0xff] }
 0x135   :  { %2422 = vmatprep.subr.bf16.mxu1 %v2534_v17  ;;  %v2453_v36 = vpack.c.bf16 %v1449_v14, %v1448_v13 }
 0x137   :  { %2179 = vmatmul.mubr.msk.f32.vlgmr.msra.gmra.mrb[22].mxu1 %vm43_vm3, %v1091_v16  ;;  %v1363_v16 = vld [vmem:[%s3044_s1 + $0x190] sm:$0xff] }
 0x138   :  { %2216 = vmatprep.mubr.msk.f32.mxu1 %vm2533_vm1, %v2532_v2  ;;  %2424 = vmatpush3.bf16.msra.mxu1 %v2423_v23  ;;  %v2444_v21 = vpack.c.bf16 %v1364_v18, %v1363_v16  ;;  %v2456_v23 = vpack.c.bf16 %v1451_v20, %v1450_v19 }
 0x139   :  { %2425 = vmatprep.subr.bf16.mxu1 %v2534_v17 }
 0x13c   :  { %2427 = vmatpush3.bf16.msra.mxu1 %v2426_v29 }
 0x13d   :  { %2428 = vmatprep.subr.bf16.mxu1 %v2534_v17 }
 0x140   :  { %2430 = vmatpush3.bf16.msra.mxu1 %v2429_v38  ;;  %v1620_v38 = vld [vmem:[%s3044_s1 + $0x230] sm:$0xff] }
 0x141   :  { %2431 = vmatprep.subr.bf16.mxu1 %v2534_v17  ;;  %v2474_v41 = vpack.c.bf16 %v1621_v39, %v1620_v38 }
 0x144   :  { %2433 = vmatpush3.bf16.msra.mxu1 %v2432_v42  ;;  %v1535_v42 = vld [vmem:[%s3044_s1 + $0x200] sm:$0xff] }
 0x145   :  { %2446 = vmatprep.subr.bf16.mxu1 %v2534_v17 }
 0x1f4   :  { %v2123_v44 = vpop.f32.mrb[14].mxu0 }
 0x1f5   :  { %v919_v45 = vadd.f32 %v2123_v44, %v1838_v43  ;;  %v903_v46 = vpop.f32.mrb[15].mxu0  ;;  %v1622_v44 = vld [vmem:[%s3044_s1 + $0x240] sm:$0xff] }
 0x1f6   :  { %v918_v47 = vadd.f32 %v1838_v43, %v903_v46 }
 0x1f7   :  { %v921_v49 = vmax.f32 %v919_v45, 0.0  ;;  %v1623_v45 = vld [vmem:[%s3044_s1 + $0x248] sm:$0xff] }
 0x1f8   :  { %v920_v50 = vmax.f32 %v918_v47, 0.0  ;;  %v2477_v47 = vpack.c.bf16 %v1623_v45, %v1622_v44 }
 0x1f9   :  { %923 = vst.msk [vmem:[#allocation4 + $0x8] sm:$0xf] %vm47_vm4, %v921_v49  ;;  %v1537_v49 = vld [vmem:[%s3044_s1 + $0x210] sm:$0xff] }
 0x1fa   :  { %922 = vst.msk [vmem:[#allocation4] sm:$0xff] %vm43_vm3, %v920_v50  ;;  %v1538_v50 = vld [vmem:[%s3044_s1 + $0x218] sm:$0xff] }
 0x20a   :  { %v2180_v51 = vpop.f32.mrb[22].mxu1 }
 0x20b   :  { %v1176_v52 = vadd.f32 %v2180_v51, %v1838_v43  ;;  %v1164_v53 = vpop.f32.mrb[23].mxu1  ;;  %v1624_v51 = vld [vmem:[%s3044_s1 + $0x250] sm:$0xff] }
 0x20c   :  { %v1175_v48 = vadd.f32 %v1838_v43, %v1164_v53  ;;  %v1536_v43 = vld [vmem:[%s3044_s1 + $0x208] sm:$0xff]  ;;  %v2468_v53 = vpack.c.bf16 %v1538_v50, %v1537_v49 }
 0x20d   :  { %v1178_v54 = vmax.f32 %v1176_v52, 0.0  ;;  %v2465_v46 = vpack.c.bf16 %v1536_v43, %v1535_v42  ;;  %v1625_v52 = vld [vmem:[%s3044_s1 + $0x258] sm:$0xff] }
 0x20e   :  { %v1177_v55 = vmax.f32 %v1175_v48, 0.0  ;;  %v2480_v48 = vpack.c.bf16 %v1625_v52, %v1624_v51 }
 0x20f   :  { %1180 = vst.msk [vmem:[#allocation4 + $0x14] sm:$0xf] %vm47_vm4, %v1178_v54 }
 0x210   :  { %1179 = vst.msk [vmem:[#allocation4 + $0xc] sm:$0xff] %vm43_vm3, %v1177_v55 }
 0x216   :  { %v1527_v54 = vld [vmem:[#allocation4 + $0x8] ss:$12 sm:$0x3]  ;;  %v1529_v55 = vld [vmem:[#allocation4 + $0x9] ss:$12 sm:$0x3] }
 0x217   :  { %v1194_v62 = vld [vmem:[#allocation4 + $0x2] ss:$12 sm:$0x3]  ;;  %v1196_v63 = vld [vmem:[#allocation4 + $0x3] ss:$12 sm:$0x3]  ;;  %v1530_v58 = vmax.f32 %v1527_v54, %v1529_v55 }
 0x218   :  { %v1197_v1 = vmax.f32 %v1194_v62, %v1196_v63  ;;  %v1181_v3 = vld [vmem:[#allocation4] ss:$12 sm:$0x3]  ;;  %v1183_v4 = vld [vmem:[#allocation4 + $0x1] ss:$12 sm:$0x3]  ;;  %v2483_v63 = vpack.c.bf16 %v1707_v61, %v1706_v60 }
 0x219   :  { %v1184_v6 = vmax.f32 %v1181_v3, %v1183_v4  ;;  %v1353_v27 = vld [vmem:[#allocation4 + $0x4] ss:$12 sm:$0x3]  ;;  %v1355_v28 = vld [vmem:[#allocation4 + $0x5] ss:$12 sm:$0x3] }
 0x21a   :  { %2198 = vmatmul.mubr.msk.f32.vlgmr.msra.gmra.mrb[16].mxu0 %vm43_vm3, %v1197_v1  ;;  %v1440_v29 = vld [vmem:[#allocation4 + $0x6] ss:$12 sm:$0x3]  ;;  %v1442_v30 = vld [vmem:[#allocation4 + $0x7] ss:$12 sm:$0x3]  ;;  %v1356_v32 = vmax.f32 %v1353_v27, %v1355_v28 }
 0x21b   :  { %2217 = vmatmul.mubr.msk.f32.vlgmr.msra.gmra.mrb[24].mxu1 %vm43_vm3, %v1184_v6  ;;  %2436 = vmatpush3.bf16.msra.mxu0 %v2435_v0  ;;  %v1443_v37 = vmax.f32 %v1440_v29, %v1442_v30  ;;  %v1614_v56 = vld [vmem:[#allocation4 + $0xa] ss:$12 sm:$0x3]  ;;  %v1616_v57 = vld [vmem:[#allocation4 + $0xb] ss:$12 sm:$0x3] }
 0x21c   :  { %2448 = vmatpush3.bf16.msra.mxu1 %v2447_v5  ;;  %2437 = vmatprep.subr.bf16.mxu0 %v2534_v17  ;;  %v1617_v59 = vmax.f32 %v1614_v56, %v1616_v57  ;;  %v1708_v62 = vld [vmem:[%s3044_s1 + $0x270] sm:$0xff]  ;;  %v1709_v0 = vld [vmem:[%s3044_s1 + $0x278] sm:$0xff]  ;;  %v1711_v3 = vld [vmem:[%s3044_s1 + $0x288] sm:$0xff] }
 0x21d   :  { %2449 = vmatprep.subr.bf16.mxu1 %v2534_v17  ;;  %2235 = vmatprep.mubr.msk.f32.mxu0 %vm2533_vm1, %v2532_v2  ;;  %v2486_v1 = vpack.c.bf16 %v1709_v0, %v1708_v62  ;;  %v1712_v5 = vld [vmem:[%s3044_s1 + $0x290] sm:$0xff]  ;;  %v1713_v6 = vld [vmem:[%s3044_s1 + $0x298] sm:$0xff]  ;;  %v1852_v27 = vld [vmem:[%s3044_s1 + $0x3] ss:$0 sm:$0xff] }
 0x21e   :  { %2254 = vmatprep.mubr.msk.f32.mxu1 %vm2533_vm1, %v2532_v2  ;;  %v2492_v7 = vpack.c.bf16 %v1713_v6, %v1712_v5 }
 0x21f   :  { %2439 = vmatpush3.bf16.msra.mxu0 %v2438_v9 }
 0x220   :  { %2451 = vmatpush3.bf16.msra.mxu1 %v2450_v10  ;;  %2440 = vmatprep.subr.bf16.mxu0 %v2534_v17 }
 0x221   :  { %2452 = vmatprep.subr.bf16.mxu1 %v2534_v17 }
 0x223   :  { %2442 = vmatpush3.bf16.msra.mxu0 %v2441_v15 }
 0x224   :  { %2454 = vmatpush3.bf16.msra.mxu1 %v2453_v36  ;;  %2443 = vmatprep.subr.bf16.mxu0 %v2534_v17 }
 0x225   :  { %2455 = vmatprep.subr.bf16.mxu1 %v2534_v17 }
 0x227   :  { %2445 = vmatpush3.bf16.msra.mxu0 %v2444_v21 }
 0x228   :  { %2457 = vmatpush3.bf16.msra.mxu1 %v2456_v23  ;;  %2458 = vmatprep.subr.bf16.mxu0 %v2534_v17 }
 0x229   :  { %2470 = vmatprep.subr.bf16.mxu1 %v2534_v17 }
 0x22a   :  { %2236 = vmatmul.mubr.msk.f32.vlgmr.msra.gmra.mrb[18].mxu0 %vm43_vm3, %v1356_v32 }
 0x22b   :  { %2255 = vmatmul.mubr.msk.f32.vlgmr.msra.gmra.mrb[26].mxu1 %vm43_vm3, %v1443_v37  ;;  %2460 = vmatpush3.bf16.msra.mxu0 %v2459_v31 }
 0x22c   :  { %2472 = vmatpush3.bf16.msra.mxu1 %v2471_v33  ;;  %2461 = vmatprep.subr.bf16.mxu0 %v2534_v17 }
 0x22d   :  { %2473 = vmatprep.subr.bf16.mxu1 %v2534_v17  ;;  %2273 = vmatprep.mubr.msk.f32.mxu0 %vm2533_vm1, %v2532_v2 }
 0x22e   :  { %2292 = vmatprep.mubr.msk.f32.mxu1 %vm2533_vm1, %v2532_v2 }
 0x22f   :  { %2463 = vmatpush3.bf16.msra.mxu0 %v2462_v40 }
 0x230   :  { %2475 = vmatpush3.bf16.msra.mxu1 %v2474_v41  ;;  %2464 = vmatprep.subr.bf16.mxu0 %v2534_v17 }
 0x231   :  { %2476 = vmatprep.subr.bf16.mxu1 %v2534_v17 }
 0x233   :  { %2466 = vmatpush3.bf16.msra.mxu0 %v2465_v46 }
 0x234   :  { %2478 = vmatpush3.bf16.msra.mxu1 %v2477_v47  ;;  %2467 = vmatprep.subr.bf16.mxu0 %v2534_v17 }
 0x235   :  { %2479 = vmatprep.subr.bf16.mxu1 %v2534_v17 }
 0x237   :  { %2469 = vmatpush3.bf16.msra.mxu0 %v2468_v53 }
 0x238   :  { %2481 = vmatpush3.bf16.msra.mxu1 %v2480_v48  ;;  %2482 = vmatprep.subr.bf16.mxu0 %v2534_v17 }
 0x23a   :  { %2274 = vmatmul.mubr.msk.f32.vlgmr.msra.gmra.mrb[20].mxu0 %vm43_vm3, %v1530_v58 }
 0x23b   :  { %2293 = vmatmul.mubr.msk.f32.vlgmr.msra.gmra.mrb[28].mxu1 %vm43_vm3, %v1617_v59  ;;  %2311 = vmatprep.mubr.msk.f32.mxu0 %vm2533_vm1, %v2532_v2  ;;  %v1710_v2 = vld [vmem:[%s3044_s1 + $0x280] sm:$0xff] }
 0x23c   :  { %2484 = vmatpush3.bf16.msra.mxu0 %v2483_v63  ;;  %v2489_v4 = vpack.c.bf16 %v1711_v3, %v1710_v2 }
 0x23d   :  { %2485 = vmatprep.subr.bf16.mxu0 %v2534_v17 }
 0x240   :  { %2487 = vmatpush3.bf16.msra.mxu0 %v2486_v1 }
 0x241   :  { %2488 = vmatprep.subr.bf16.mxu0 %v2534_v17 }
 0x244   :  { %2490 = vmatpush3.bf16.msra.mxu0 %v2489_v4 }
 0x245   :  { %2491 = vmatprep.subr.bf16.mxu0 %v2534_v17 }
 0x248   :  { %2493 = vmatpush3.bf16.msra.mxu0 %v2492_v7 }
 0x2ed   :  { %v1275_v8 = vpop.f32.mrb[16].mxu0 }
 0x2ee   :  { %v1348_v9 = vpop.f32.mrb[24].mxu1  ;;  %v2199_v10 = vpop.f32.mrb[17].mxu0 }
 0x2ef   :  { %v1349_v11 = vadd.f32 %v1348_v9, %v1275_v8  ;;  %v2218_v12 = vpop.f32.mrb[25].mxu1 }
 0x2fd   :  { %v1434_v13 = vpop.f32.mrb[18].mxu0 }
 0x2fe   :  { %v1438_v14 = vadd.f32 %v1434_v13, %v1349_v11  ;;  %v1521_v15 = vpop.f32.mrb[26].mxu1  ;;  %v2237_v36 = vpop.f32.mrb[19].mxu0 }
 0x2ff   :  { %v2256_v17 = vpop.f32.mrb[27].mxu1 }
 0x300   :  { %v1525_v16 = vadd.f32 %v1521_v15, %v1438_v14 }
 0x30d   :  { %v1608_v18 = vpop.f32.mrb[20].mxu0 }
 0x30e   :  { %v1612_v19 = vadd.f32 %v1608_v18, %v1525_v16  ;;  %v1695_v20 = vpop.f32.mrb[28].mxu1  ;;  %v2275_v21 = vpop.f32.mrb[21].mxu0 }
 0x30f   :  { %v2294_v23 = vpop.f32.mrb[29].mxu1 }
 0x310   :  { %v1699_v24 = vadd.f32 %v1695_v20, %v1612_v19 }
 0x312   :  { %v1704_v25 = vadd.f32 %v1851_v22, %v1699_v24 }
 0x314   :  { %v1705_v26 = vmax.f32 %v1704_v25, 0.0 }
 0x316   :  { %2312 = vmatmul.mubr.msk.f32.vlgmr.msra.gmra.mrb[22].mxu0 %vm43_vm3, %v1705_v26 }
 0x3e9   :  { %v1787_v28 = vpop.f32.mrb[22].mxu0 }
 0x3ea   :  { %v1788_v29 = vadd.f32 %v1852_v27, %v1787_v28  ;;  %v2313_v30 = vpop.f32.mrb[23].mxu0 }
 0x3ec   :  { %1792 = vst.msk [vmem:[#allocation5] sm:$0x3] %vm1791_vm5, %v1788_v29 }
 0x3ed   :  { %2519 = shalt.err (!%p2516_p4)
}
 0x3ee   :  { %s2520_s22 = scalar_lea.hbm %s3045_s2, 32 }
 0x3ef   :  { %p2521_p5 = scmp.ne.s32.totalorder %s3045_s2, %s2520_s22  ;;  %p2524_p6 = scmp.lt.u32.totalorder %s2520_s22, %s3045_s2 }
 0x3f1   :  { %p2526_p7 = pnand %p2524_p6, %p2521_p5 }
 0x3f3   :  { %2529 = shalt.err (!%p2526_p7)
}
 0x3f4   :  { %1802 = dma.vmem_to_hbm [thread:$0]  %s1800_s18, 32, %s3045_s2, [#allocation6]  }
 0x3f5   :  { %2530 = dma.done.wait [#allocation6], 32  }
 0x3f6   :  { %2531 = vsyncadd [#allocation6], 4294967264 }
 0x3f7   :  { %1806 = vsyncpa [#allocation6], 1 }

</bundles_post_ra>
